<compile_context>
chip_gen: v5e
topology: v5e:2x2
jax: 0.10.0
libtpu: 0.0.40
codegen_flags: <defaults>
</compile_context>

<pallas_src>
import jax
import jax.numpy as jnp
from jax.experimental import pallas as pl
from jax.experimental.pallas import tpu as pltpu

INPUT_SIZE = 28 * 28   # 784
HIDDEN = 30
CLASSES = 10

# Row-tile cap. Big enough that per-grid-step overhead (<~0.35 us) is <10% of
# the per-tile x DMA on v5e/v6e/v7x; small enough that f32 x double-buffering
# (~28 MiB at tb=4096) fits every generation's VMEM under the 48 MiB limit.
TILE_B = 4096


def smallnet_kernel(x_ref, w1_ref, b1_ref, w2_ref, b2_ref, o_ref):
    # fc1: cast the f32 x tile to bf16 on the VPU (free vs. the DMA), run a
    # single-pass bf16 MXU matmul with f32 accumulation, add bias, ReLU.
    x_bf = x_ref[...].astype(jnp.bfloat16)
    h = jnp.dot(x_bf, w1_ref[...], preferred_element_type=jnp.float32)
    h = jnp.maximum(h + b1_ref[...], 0.0)          # b1 (1, HIDDEN) broadcasts
    # fc_output (tiny; <1% of work) stays in f32.
    out = jnp.dot(h, w2_ref[...], preferred_element_type=jnp.float32)
    o_ref[...] = (out + b2_ref[...]).astype(o_ref.dtype)


def _round_up(n, m):
    return ((n + m - 1) // m) * m


def _choose_tile(B, tile_cap):
    """Row tile: multiple of 8 (or == B when B <= 8), grid >= 2 when B > 8
    (v7x megacore), and sized to B so padded-DMA waste in the last tile is
    minimal. No jnp.pad is ever applied to x."""
    if B <= 8:
        return B
    tile_cap = max(8, _round_up(min(tile_cap, B), 8))
    n_tiles = max(2, pl.cdiv(B, tile_cap))
    return min(_round_up(pl.cdiv(B, n_tiles), 8), tile_cap)


def smallnet_forward(x, w1, b1, w2, b2, *, tile_b=TILE_B):
    """x: (B, 784) f32. w1: (784, 30), b1: (1, 30), w2: (30, 10), b2: (1, 10).

    Returns (B, 10) f32 logits. Any B is handled without padding copies:
    the last (possibly partial) block is clamped by Pallas.
    """
    B = x.shape[0]
    tb = _choose_tile(B, tile_b)
    grid = (pl.cdiv(B, tb),)

    # w1 cast is a one-shot ~47 KB op; x itself streams f32 (no extra HBM pass).
    w1_bf = w1.astype(jnp.bfloat16)

    return pl.pallas_call(
        smallnet_kernel,
        out_shape=jax.ShapeDtypeStruct((B, CLASSES), jnp.float32),
        grid=grid,
        in_specs=[
            # x: tiled over the batch grid -> auto double-buffered DMA.
            pl.BlockSpec((tb, INPUT_SIZE), lambda i: (i, 0)),
            # Weights / biases: constant index_map -> fetched once, VMEM-resident.
            pl.BlockSpec((INPUT_SIZE, HIDDEN), lambda i: (0, 0)),
            pl.BlockSpec((1, HIDDEN), lambda i: (0, 0)),
            pl.BlockSpec((HIDDEN, CLASSES), lambda i: (0, 0)),
            pl.BlockSpec((1, CLASSES), lambda i: (0, 0)),
        ],
        out_specs=pl.BlockSpec((tb, CLASSES), lambda i: (i, 0)),
        compiler_params=pltpu.CompilerParams(
            # Batch tiles are independent -> shard across TCs on v7x megacore.
            dimension_semantics=("parallel",),
            # ~33 MiB peak at tb=4096 (f32 x double-buffer + f32 out + weights);
            # 48 MiB leaves headroom on v7x (64 MiB physical) and is well under
            # v5e/v6e's 128 MiB.
            vmem_limit_bytes=48 * 1024 * 1024,
        ),
    )(x, w1_bf, b1, w2, b2)


def init_params(key):
    """Deterministic init matching PyTorch Linear shapes (stored transposed)."""
    k1, k2, k3, k4 = jax.random.split(key, 4)
    # PyTorch default: U(-1/sqrt(fan_in), 1/sqrt(fan_in))
    bound1 = 1.0 / jnp.sqrt(float(INPUT_SIZE))
    bound2 = 1.0 / jnp.sqrt(float(HIDDEN))
    w1 = jax.random.uniform(k1, (INPUT_SIZE, HIDDEN), jnp.float32, -bound1, bound1)
    b1 = jax.random.uniform(k2, (1, HIDDEN), jnp.float32, -bound1, bound1)
    w2 = jax.random.uniform(k3, (HIDDEN, CLASSES), jnp.float32, -bound2, bound2)
    b2 = jax.random.uniform(k4, (1, CLASSES), jnp.float32, -bound2, bound2)
    return w1, b1, w2, b2


def _ref_forward(x, w1, b1, w2, b2, emulate_bf16=True):
    """Pure-JAX reference. emulate_bf16 mirrors the kernel's in-body bf16 cast."""
    if emulate_bf16:
        x = x.astype(jnp.bfloat16).astype(jnp.float32)
        w1 = w1.astype(jnp.bfloat16).astype(jnp.float32)
    return jnp.maximum(x @ w1 + b1, 0.0) @ w2 + b2


if __name__ == "__main__":
    key = jax.random.PRNGKey(0)
    kx, kp = jax.random.split(key)
    w1, b1, w2, b2 = init_params(kp)

    # Small test: B=2 -> single (2, 784) full-array block, grid=(1,).
    B = 2
    x = jax.random.normal(kx, (B, INPUT_SIZE), jnp.float32)
    out = jax.block_until_ready(smallnet_forward(x, w1, b1, w2, b2))
    assert out.shape == (B, CLASSES)
    ref_bf16 = _ref_forward(x, w1, b1, w2, b2, emulate_bf16=True)
    ref_f32 = _ref_forward(x, w1, b1, w2, b2, emulate_bf16=False)
    assert jnp.allclose(out, ref_bf16, atol=1e-3, rtol=1e-3)   # kernel-exact path
    assert jnp.allclose(out, ref_f32, atol=5e-2, rtol=5e-2)    # bf16 vs f32 drift

    # Exercise grid > 1 with a clamped (partial) final block and no padding copy:
    # B=20, tile cap 8 -> tb=8, grid=(3,), last block has 4 valid rows.
    B2 = 20
    x2 = jax.random.normal(jax.random.PRNGKey(1), (B2, INPUT_SIZE), jnp.float32)
    out2 = jax.block_until_ready(smallnet_forward(x2, w1, b1, w2, b2, tile_b=8))
    assert out2.shape == (B2, CLASSES)
    assert jnp.allclose(out2, _ref_forward(x2, w1, b1, w2, b2), atol=1e-3, rtol=1e-3)

    # Default tile picking for the same ragged batch: tb=16, grid=(2,) (megacore).
    out3 = jax.block_until_ready(smallnet_forward(x2, w1, b1, w2, b2))
    assert jnp.allclose(out3, _ref_forward(x2, w1, b1, w2, b2), atol=1e-3, rtol=1e-3)

    print("KERNEL_OK")
</pallas_src>

<mosaic_0001>
module attributes {stable_mosaic.version = 11 : i64} {
  func.func @smallnet_kernel(%arg0: i32, %arg1: memref<2x784xf32, #tpu.memory_space<vmem>>, %arg2: memref<784x30xbf16, #tpu.memory_space<vmem>>, %arg3: memref<1x30xf32, #tpu.memory_space<vmem>>, %arg4: memref<30x10xf32, #tpu.memory_space<vmem>>, %arg5: memref<1x10xf32, #tpu.memory_space<vmem>>, %arg6: memref<2x10xf32, #tpu.memory_space<vmem>>) attributes {dimension_semantics = [#tpu.dimension_semantics<parallel>], iteration_bounds = array<i64: 1>, scalar_prefetch = 0 : i64, scratch_operands = 0 : i64, tpu.core_type = #tpu.core_type<tc>, window_params = [{transform_indices = @transform_0, window_bounds = array<i64: 2, 784>}, {pipeline_mode = #tpu.pipeline_mode<synchronous>, transform_indices = @transform_1, window_bounds = array<i64: 784, 30>}, {pipeline_mode = #tpu.pipeline_mode<synchronous>, transform_indices = @transform_2, window_bounds = array<i64: 1, 30>}, {pipeline_mode = #tpu.pipeline_mode<synchronous>, transform_indices = @transform_3, window_bounds = array<i64: 30, 10>}, {pipeline_mode = #tpu.pipeline_mode<synchronous>, transform_indices = @transform_4, window_bounds = array<i64: 1, 10>}, {transform_indices = @transform_5, window_bounds = array<i64: 2, 10>}]} {
    %c0 = arith.constant 0 : index
    %c0_0 = arith.constant 0 : index
    %0 = vector.load %arg1[%c0, %c0_0] : memref<2x784xf32, #tpu.memory_space<vmem>>, vector<2x784xf32>
    %1 = arith.truncf %0 : vector<2x784xf32> to vector<2x784xbf16>
    %c0_1 = arith.constant 0 : index
    %c0_2 = arith.constant 0 : index
    %2 = vector.load %arg2[%c0_1, %c0_2] : memref<784x30xbf16, #tpu.memory_space<vmem>>, vector<784x30xbf16>
    %cst = arith.constant dense<0.000000e+00> : vector<2x30xf32>
    %3 = tpu.matmul %1, %2, %cst {dimension_numbers = #tpu.dot_dimension_numbers<[1], [0], [0], [1], [0, 0, 1, 1], [], []>} : vector<2x784xbf16>, vector<784x30xbf16>, vector<2x30xf32> -> vector<2x30xf32>
    %c0_3 = arith.constant 0 : index
    %c0_4 = arith.constant 0 : index
    %4 = vector.load %arg3[%c0_3, %c0_4] : memref<1x30xf32, #tpu.memory_space<vmem>>, vector<1x30xf32>
    %5 = vector.broadcast %4 : vector<1x30xf32> to vector<2x30xf32>
    %6 = arith.addf %3, %5 : vector<2x30xf32>
    %cst_5 = arith.constant 0.000000e+00 : f32
    %7 = vector.broadcast %cst_5 : f32 to vector<2x30xf32>
    %8 = arith.maximumf %6, %7 : vector<2x30xf32>
    %c0_6 = arith.constant 0 : index
    %c0_7 = arith.constant 0 : index
    %9 = vector.load %arg4[%c0_6, %c0_7] : memref<30x10xf32, #tpu.memory_space<vmem>>, vector<30x10xf32>
    %cst_8 = arith.constant dense<0.000000e+00> : vector<2x10xf32>
    %10 = tpu.matmul %8, %9, %cst_8 {dimension_numbers = #tpu.dot_dimension_numbers<[1], [0], [0], [1], [0, 0, 1, 1], [], []>} : vector<2x30xf32>, vector<30x10xf32>, vector<2x10xf32> -> vector<2x10xf32>
    %c0_9 = arith.constant 0 : index
    %c0_10 = arith.constant 0 : index
    %11 = vector.load %arg5[%c0_9, %c0_10] : memref<1x10xf32, #tpu.memory_space<vmem>>, vector<1x10xf32>
    %12 = vector.broadcast %11 : vector<1x10xf32> to vector<2x10xf32>
    %13 = arith.addf %10, %12 : vector<2x10xf32>
    %c0_11 = arith.constant 0 : index
    %c0_12 = arith.constant 0 : index
    %14 = vector.load %arg6[%c0_11, %c0_12] : memref<2x10xf32, #tpu.memory_space<vmem>>, vector<2x10xf32>
    tpu.vector_store %arg6[%c0_11, %c0_12], %13 {strides = array<i32>} : memref<2x10xf32, #tpu.memory_space<vmem>>, vector<2x10xf32>,
    return
  }
  func.func @transform_0(%arg0: i32) -> (i32, i32) {
    %c0_i32 = arith.constant 0 : i32
    %c0_i32_0 = arith.constant 0 : i32
    return %arg0, %c0_i32 : i32, i32
  }
  func.func @transform_1(%arg0: i32) -> (i32, i32) {
    %c0_i32 = arith.constant 0 : i32
    %c0_i32_0 = arith.constant 0 : i32
    %c0_i32_1 = arith.constant 0 : i32
    return %c0_i32, %c0_i32_0 : i32, i32
  }
  func.func @transform_2(%arg0: i32) -> (i32, i32) {
    %c0_i32 = arith.constant 0 : i32
    %c0_i32_0 = arith.constant 0 : i32
    %c0_i32_1 = arith.constant 0 : i32
    return %c0_i32, %c0_i32_0 : i32, i32
  }
  func.func @transform_3(%arg0: i32) -> (i32, i32) {
    %c0_i32 = arith.constant 0 : i32
    %c0_i32_0 = arith.constant 0 : i32
    %c0_i32_1 = arith.constant 0 : i32
    return %c0_i32, %c0_i32_0 : i32, i32
  }
  func.func @transform_4(%arg0: i32) -> (i32, i32) {
    %c0_i32 = arith.constant 0 : i32
    %c0_i32_0 = arith.constant 0 : i32
    %c0_i32_1 = arith.constant 0 : i32
    return %c0_i32, %c0_i32_0 : i32, i32
  }
  func.func @transform_5(%arg0: i32) -> (i32, i32) {
    %c0_i32 = arith.constant 0 : i32
    %c0_i32_0 = arith.constant 0 : i32
    return %arg0, %c0_i32 : i32, i32
  }
}

</mosaic_0001>

<bundles_post_ra>
// kernel: tpu_custom_call.1
= control target key start
LH: loop header
LB: loop body
LE: loop exit
PB: predicated region body
PF: predicated region fallthrough
CT: control target
= control target key end

     0   :  { %s1078_s0 = inlined_call_operand.vmem [shape: f32[2,784], index: 0, kind: input, shape index: {}]   ;;  %s1079_s1 = inlined_call_operand.vmem [shape: bf16[784,30], index: 1, kind: input, shape index: {}]   ;;  %s1080_s2 = inlined_call_operand.vmem [shape: f32[1,30], index: 2, kind: input, shape index: {}]   ;;  %s1081_s3 = inlined_call_operand.vmem [shape: f32[30,10], index: 3, kind: input, shape index: {}]   ;;  %s1082_s4 = inlined_call_operand.vmem [shape: f32[1,10], index: 4, kind: input, shape index: {}]   ;;  %s1083_s5 = inlined_call_operand.hbm [shape: f32[2,10], index: 5, kind: output, shape index: {}]  }
   0x1   :  { %v802_v0 = vld [vmem:[%s1079_s1 + $0x38] sm:$0xff]  ;;  %v801_v3 = vld [vmem:[%s1079_s1 + $0x30] sm:$0xff]  ;;  %v800_v8 = vld [vmem:[%s1079_s1 + $0x28] sm:$0xff] }
   0x2   :  { %v810_v1 = vld [vmem:[%s1079_s1 + $0x78] sm:$0xff]  ;;  %450 = vmatpush.bf16.msra.mxu0 %v802_v0  ;;  %v809_v4 = vld [vmem:[%s1079_s1 + $0x70] sm:$0xff]  ;;  %v808_v9 = vld [vmem:[%s1079_s1 + $0x68] sm:$0xff] }
   0x3   :  { %v818_v2 = vld [vmem:[%s1079_s1 + $0xb8] sm:$0xff]  ;;  %463 = vmatpush.bf16.msra.mxu1 %v810_v1  ;;  %v817_v5 = vld [vmem:[%s1079_s1 + $0xb0] sm:$0xff]  ;;  %v816_v10 = vld [vmem:[%s1079_s1 + $0xa8] sm:$0xff] }
   0x4   :  { %476 = vmatpush.bf16.msra.mxu2 %v818_v2  ;;  %v826_v6 = vld [vmem:[%s1079_s1 + $0xf8] sm:$0xff]  ;;  %v825_v7 = vld [vmem:[%s1079_s1 + $0xf0] sm:$0xff]  ;;  %v824_v11 = vld [vmem:[%s1079_s1 + $0xe8] sm:$0xff] }
   0x5   :  { %489 = vmatpush.bf16.msra.mxu3 %v826_v6  ;;  %v799_v12 = vld [vmem:[%s1079_s1 + $0x20] sm:$0xff]  ;;  %v798_v17 = vld [vmem:[%s1079_s1 + $0x18] sm:$0xff]  ;;  %v23_v19 = vld [vmem:[%s1078_s0 + $0x8] sm:$0x3f] }
   0x6   :  { %451 = vmatpush.bf16.msra.mxu0 %v801_v3  ;;  %v807_v13 = vld [vmem:[%s1079_s1 + $0x60] sm:$0xff]  ;;  %v806_v18 = vld [vmem:[%s1079_s1 + $0x58] sm:$0xff]  ;;  %28 = vst [vmem:[#allocation1 + $0x20] ss:$4 sm:$0xff] %v23_v19 }
   0x7   :  { %464 = vmatpush.bf16.msra.mxu1 %v809_v4  ;;  %v815_v14 = vld [vmem:[%s1079_s1 + $0xa0] sm:$0xff]  ;;  %v814_v20 = vld [vmem:[%s1079_s1 + $0x98] sm:$0xff] }
   0x8   :  { %477 = vmatpush.bf16.msra.mxu2 %v817_v5  ;;  %v22_v15 = vld [vmem:[%s1078_s0] sm:$0xff] }
   0x9   :  { %490 = vmatpush.bf16.msra.mxu3 %v825_v7  ;;  %26 = vst [vmem:[#allocation1] ss:$4 sm:$0xff] %v22_v15  ;;  %v823_v16 = vld [vmem:[%s1079_s1 + $0xe0] sm:$0xff] }
   0xa   :  { %452 = vmatpush.bf16.msra.mxu0 %v800_v8 }
   0xb   :  { %465 = vmatpush.bf16.msra.mxu1 %v808_v9 }
   0xc   :  { %478 = vmatpush.bf16.msra.mxu2 %v816_v10 }
   0xd   :  { %491 = vmatpush.bf16.msra.mxu3 %v824_v11 }
   0xe   :  { %453 = vmatpush.bf16.msra.mxu0 %v799_v12 }
   0xf   :  { %466 = vmatpush.bf16.msra.mxu1 %v807_v13 }
  0x10   :  { %479 = vmatpush.bf16.msra.mxu2 %v815_v14 }
  0x11   :  { %10 = vsyncpa [#allocation3], 0  ;;  %492 = vmatpush.bf16.msra.mxu3 %v823_v16  ;;  %v822_v21 = vld [vmem:[%s1079_s1 + $0xd8] sm:$0xff]  ;;  %v797_v22 = vld [vmem:[%s1079_s1 + $0x10] sm:$0xff]  ;;  %vm446_vm0 = vcmask 130048   ;;  %vm554_vm1 = vcmask 1045504  }
  0x12   :  { %454 = vmatpush.bf16.msra.mxu0 %v798_v17  ;;  %v805_v23 = vld [vmem:[%s1079_s1 + $0x50] sm:$0xff]  ;;  %v796_v26 = vld [vmem:[%s1079_s1 + $0x8] sm:$0xff]  ;;  %v795_v29 = vld [vmem:[%s1079_s1] sm:$0xff]  ;;  %vm550_vm2 = vcmask 244736   ;;  %s873_s26 = smov [#allocation2]   ;;  %s587_s30 = sshll.u32 %s1083_s5, 4  ;;  %s588_s30 = int_to_ptr.hbm [resolvable:$true] %s587_s30 }
  0x13   :  { %467 = vmatpush.bf16.msra.mxu1 %v806_v18  ;;  %v813_v24 = vld [vmem:[%s1079_s1 + $0x90] sm:$0xff]  ;;  %v804_v27 = vld [vmem:[%s1079_s1 + $0x48] sm:$0xff]  ;;  %v803_v30 = vld [vmem:[%s1079_s1 + $0x40] sm:$0xff]  ;;  %s585_s27 = sshll.u32 %s873_s26, 4  ;;  %vm578_vm3 = vcmask 74752   ;;  %s586_s27 = int_to_ptr.vmem [resolvable:$true] %s585_s27 }
  0x14   :  { %480 = vmatpush.bf16.msra.mxu2 %v814_v20  ;;  %v821_v25 = vld [vmem:[%s1079_s1 + $0xd0] sm:$0xff]  ;;  %v812_v28 = vld [vmem:[%s1079_s1 + $0x88] sm:$0xff]  ;;  %v29_v32 = vld.sshfl [vmem:[#allocation1] sm:$0xff pattern:$0x73625140] }
  0x15   :  { %493 = vmatpush.bf16.msra.mxu3 %v822_v21  ;;  %v820_v31 = vld [vmem:[%s1079_s1 + $0xc8] sm:$0xff]  ;;  %v834_v34 = vld [vmem:[%s1079_s1 + $0x138] sm:$0xff]  ;;  %v811_v36 = vld [vmem:[%s1079_s1 + $0x80] sm:$0xff]  ;;  %v43_v38 = vpack.c.bf16 %v29_v32, %v29_v32 }
  0x16   :  { %455 = vmatpush.bf16.msra.mxu0 %v797_v22  ;;  %v30_v33 = vld.sshfl [vmem:[#allocation1 + $0x8] sm:$0xff pattern:$0x73625140]  ;;  %v842_v35 = vld [vmem:[%s1079_s1 + $0x178] sm:$0xff]  ;;  %v819_v40 = vld [vmem:[%s1079_s1 + $0xc0] sm:$0xff] }
  0x17   :  { %468 = vmatpush.bf16.msra.mxu1 %v805_v23  ;;  %v31_v37 = vld.sshfl [vmem:[#allocation1 + $0x10] sm:$0xff pattern:$0x73625140]  ;;  %v44_v39 = vpack.c.bf16 %v30_v33, %v30_v33  ;;  %v843_v41 = vld [vmem:[%s1079_s1 + $0x180] sm:$0xff]  ;;  %v832_v47 = vld [vmem:[%s1079_s1 + $0x128] sm:$0xff] }
  0x18   :  { %481 = vmatpush.bf16.msra.mxu2 %v813_v24  ;;  %v32_v42 = vld.sshfl [vmem:[#allocation1 + $0x18] sm:$0xff pattern:$0x73625140]  ;;  %v833_v43 = vld [vmem:[%s1079_s1 + $0x130] sm:$0xff]  ;;  %v45_v45 = vpack.c.bf16 %v31_v37, %v31_v37  ;;  %v840_v48 = vld [vmem:[%s1079_s1 + $0x168] sm:$0xff] }
  0x19   :  { %494 = vmatpush.bf16.msra.mxu3 %v821_v25  ;;  %v841_v44 = vld [vmem:[%s1079_s1 + $0x170] sm:$0xff]  ;;  %v46_v46 = vpack.c.bf16 %v32_v42, %v32_v42  ;;  %v831_v49 = vld [vmem:[%s1079_s1 + $0x120] sm:$0xff]  ;;  %v830_v51 = vld [vmem:[%s1079_s1 + $0x118] sm:$0xff] }
  0x1a   :  { %456 = vmatpush.bf16.msra.mxu0 %v796_v26  ;;  %v839_v50 = vld [vmem:[%s1079_s1 + $0x160] sm:$0xff]  ;;  %v838_v52 = vld [vmem:[%s1079_s1 + $0x158] sm:$0xff]  ;;  %v35_v53 = vld.sshfl [vmem:[#allocation1 + $0x30] sm:$0xff pattern:$0x73625140] }
  0x1b   :  { %469 = vmatpush.bf16.msra.mxu1 %v804_v27  ;;  %v829_v54 = vld [vmem:[%s1079_s1 + $0x110] sm:$0xff]  ;;  %v49_v56 = vpack.c.bf16 %v35_v53, %v35_v53  ;;  %v828_v57 = vld [vmem:[%s1079_s1 + $0x108] sm:$0xff]  ;;  %v827_v59 = vld [vmem:[%s1079_s1 + $0x100] sm:$0xff] }
  0x1c   :  { %482 = vmatpush.bf16.msra.mxu2 %v812_v28  ;;  %v837_v55 = vld [vmem:[%s1079_s1 + $0x150] sm:$0xff]  ;;  %v836_v58 = vld [vmem:[%s1079_s1 + $0x148] sm:$0xff]  ;;  %v835_v60 = vld [vmem:[%s1079_s1 + $0x140] sm:$0xff] }
  0x1d   :  { %495 = vmatpush.bf16.msra.mxu3 %v820_v31  ;;  %v33_v61 = vld.sshfl [vmem:[#allocation1 + $0x20] sm:$0xff pattern:$0x73625140]  ;;  %v34_v62 = vld.sshfl [vmem:[#allocation1 + $0x28] sm:$0xff pattern:$0x73625140] }
  0x1e   :  { %457 = vmatpush.bf16.msra.mxu0 %v795_v29  ;;  %v47_v63 = vpack.c.bf16 %v33_v61, %v33_v61  ;;  %v48_v0 = vpack.c.bf16 %v34_v62, %v34_v62  ;;  %v545_v1 = vld [vmem:[%s1081_s3 + $0x18] sm:$0x3f]  ;;  %v544_v2 = vld [vmem:[%s1081_s3 + $0x10] sm:$0xff]  ;;  %v543_v5 = vld [vmem:[%s1081_s3 + $0x8] sm:$0xff] }
  0x1f   :  { %470 = vmatpush.bf16.msra.mxu1 %v803_v30  ;;  %v542_v6 = vld [vmem:[%s1081_s3] sm:$0xff] }
  0x20   :  { %483 = vmatpush.bf16.msra.mxu2 %v811_v36  ;;  %v845_v11 = vld [vmem:[%s1080_s2] ss:$0 sm:$0xff] }
  0x21   :  { %458 = vmatmul.bf16.vlgmr.msra.gmra.mxu0 %v43_v38  ;;  %496 = vmatpush.bf16.msra.mxu3 %v819_v40  ;;  %v846_v28 = vld [vmem:[%s1082_s4] ss:$0 sm:$0xff] }
  0x22   :  { %502 = vmatpush.bf16.msrb.mxu0 %v834_v34  ;;  %471 = vmatmul.bf16.vlgmr.msra.gmra.mxu1 %v44_v39 }
  0x23   :  { %515 = vmatpush.bf16.msrb.mxu1 %v842_v35  ;;  %484 = vmatmul.bf16.vlgmr.msra.gmra.mxu2 %v45_v45 }
  0x24   :  { %535 = vmatpush.bf16.msrb.mxu2 %v843_v41  ;;  %497 = vmatmul.bf16.vlgmr.msra.gmra.mxu3 %v46_v46 }
  0x25   :  { %793 = vmatpush.msk.msrb.mxu3 %vm554_vm1, %v545_v1 }
  0x26   :  { %503 = vmatpush.bf16.msrb.mxu0 %v833_v43 }
  0x27   :  { %516 = vmatpush.bf16.msrb.mxu1 %v841_v44  ;;  %571 = vmatpush.msrb.mxu3 %v544_v2 }
  0x29   :  { %572 = vmatpush.msrb.mxu3 %v543_v5 }
  0x2a   :  { %504 = vmatpush.bf16.msrb.mxu0 %v832_v47 }
  0x2b   :  { %517 = vmatpush.bf16.msrb.mxu1 %v840_v48  ;;  %573 = vmatpush.msrb.mxu3 %v542_v6 }
  0x2e   :  { %505 = vmatpush.bf16.msrb.mxu0 %v831_v49 }
  0x2f   :  { %518 = vmatpush.bf16.msrb.mxu1 %v839_v50 }
  0x32   :  { %506 = vmatpush.bf16.msrb.mxu0 %v830_v51 }
  0x33   :  { %519 = vmatpush.bf16.msrb.mxu1 %v838_v52  ;;  %792 = vmatmul.msk.bf16.vlgmr.msrb.gmra.mxu2 %vm446_vm0, %v49_v56 }
  0x36   :  { %507 = vmatpush.bf16.msrb.mxu0 %v829_v54 }
  0x37   :  { %520 = vmatpush.bf16.msrb.mxu1 %v837_v55 }
  0x3a   :  { %508 = vmatpush.bf16.msrb.mxu0 %v828_v57 }
  0x3b   :  { %521 = vmatpush.bf16.msrb.mxu1 %v836_v58 }
  0x3e   :  { %509 = vmatpush.bf16.msrb.mxu0 %v827_v59 }
  0x3f   :  { %522 = vmatpush.bf16.msrb.mxu1 %v835_v60 }
  0x41   :  { %510 = vmatmul.bf16.vlgmr.msrb.gmra.mxu0 %v47_v63 }
  0x42   :  { %523 = vmatmul.bf16.vlgmr.msrb.gmra.mxu1 %v48_v0 }
  0x9e   :  { %v459_v3 = vpop.f32.mrf.mxu0 }
  0x9f   :  { %v472_v4 = vpop.f32.mrf.mxu1  ;;  %v460_v12 = vadd.f32 %v845_v11, %v459_v3 }
  0xa1   :  { %v473_v15 = vadd.f32 %v472_v4, %v460_v12 }
  0xa6   :  { %v461_v7 = vpop.f32.mrf.mxu0  ;;  %v485_v9 = vpop.f32.mrf.mxu2 }
  0xa7   :  { %v474_v8 = vpop.f32.mrf.mxu1  ;;  %v498_v10 = vpop.f32.mrf.mxu3  ;;  %v486_v16 = vadd.f32 %v485_v9, %v473_v15 }
  0xa9   :  { %v499_v18 = vadd.f32 %v498_v10, %v486_v16 }
  0xae   :  { %v487_v13 = vpop.f32.mrf.mxu2 }
  0xaf   :  { %v500_v14 = vpop.f32.mrf.mxu3 }
  0xb6   :  { %v537_v17 = vpop.f32.mrf.mxu2 }
  0xbe   :  { %v511_v19 = vpop.f32.mrf.mxu0  ;;  %v539_v23 = vpop.f32.mrf.mxu2 }
  0xbf   :  { %v524_v20 = vpop.f32.mrf.mxu1  ;;  %v512_v21 = vadd.f32 %v511_v19, %v499_v18 }
  0xc1   :  { %v525_v22 = vadd.f32 %v524_v20, %v512_v21 }
  0xc3   :  { %v538_v24 = vadd.f32 %v537_v17, %v525_v22 }
  0xc5   :  { %v541_v25 = vmax.f32 %v538_v24, 0.0 }
  0xc6   :  { %v513_v26 = vpop.f32.mrf.mxu0 }
  0xc7   :  { %v526_v27 = vpop.f32.mrf.mxu1  ;;  %794 = vmatmul.msk.f32.vlgmr.msrb.gmra.mxu3 %vm550_vm2, %v541_v25 }
 0x14a   :  { %v575_v29 = vpop.f32.mrf.mxu3 }
 0x14b   :  { %v576_v30 = vadd.f32 %v846_v28, %v575_v29 }
 0x14d   :  { %579 = vst.msk [vmem:[#allocation2] sm:$0x3] %vm578_vm3, %v576_v30 }
 0x14e   :  { %590 = dma.vmem_to_hbm [thread:$0]  %s586_s27, 32, %s588_s30, [#allocation3]  }
 0x14f   :  { %871 = dma.done.wait [#allocation3], 32  }
 0x150   :  { %872 = vsyncadd [#allocation3], 4294967264 }
 0x151   :  { %595 = vsyncpa [#allocation3], 1 }

</bundles_post_ra>
